<compile_context>
chip_gen: v6e
topology: v6e:2x2x1
jax: 0.10.0
libtpu: 0.0.40
codegen_flags: <defaults>
</compile_context>

<pallas_src>
import jax
import jax.numpy as jnp
from jax.experimental import pallas as pl
from jax.experimental.pallas import tpu as pltpu

_LANE = 128            # pad hidden / output feature dims to this (lane width)
_MIN_TB = 16           # bf16 sublane packing -> batch tiles multiple of 16
_HEADROOM_BYTES = 8 << 20   # reserve for Mosaic internal scratch


def _round_up(n, m):
    return ((n + m - 1) // m) * m


def _pad_to(a, shape):
    pads = [(0, t - s) for s, t in zip(a.shape, shape)]
    return jnp.pad(a, pads) if any(p[1] for p in pads) else a


def _vmem_cap_bytes():
    # Generation-aware physical VMEM per TensorCore (v5e/v6e: 128 MiB, v7x: 64 MiB).
    try:
        return int(pltpu.get_tpu_info().vmem_capacity_bytes)
    except Exception:
        return 64 << 20  # conservative (v7x) fallback if the query is unavailable


def _mlp_kernel(x_ref,
                w1_ref, b1_ref,
                w2_ref, b2_ref,
                w3_ref, b3_ref,
                w4_ref, b4_ref,
                out_ref):
    # x arrives f32 (unpadded feature dim); cast to bf16 for the MXU operands,
    # accumulate in f32, keep bias add / ReLU in f32.
    x = x_ref[...].astype(jnp.bfloat16)
    h = jnp.dot(x, w1_ref[...], preferred_element_type=jnp.float32) + b1_ref[...]
    h = jnp.maximum(h, 0.0)

    h = jnp.dot(h.astype(jnp.bfloat16), w2_ref[...],
                preferred_element_type=jnp.float32) + b2_ref[...]
    h = jnp.maximum(h, 0.0)

    h = jnp.dot(h.astype(jnp.bfloat16), w3_ref[...],
                preferred_element_type=jnp.float32) + b3_ref[...]
    h = jnp.maximum(h, 0.0)

    y = jnp.dot(h.astype(jnp.bfloat16), w4_ref[...],
                preferred_element_type=jnp.float32) + b4_ref[...]

    # Lane-dense (multiple-of-128) bf16 store -> unmasked vst, half the bytes.
    out_ref[...] = y.astype(out_ref.dtype)


def prepare_params(params):
    """One-time pad + f32->bf16 cast of the weights (hoisted out of forward).

    `params[name] = (w, b)` with w: [in, out] (transpose of PyTorch's [out, in])
    and b: [out] or [1, out].  Hidden/output feature dims are zero-padded to a
    multiple of 128 (zero padding keeps padded lanes exactly zero through
    bias add and ReLU, so the math is preserved).
    """
    layers = ["input_layer", "hidden_layer1", "hidden_layer2", "output_layer"]
    (w1, b1), (w2, b2), (w3, b3), (w4, b4) = (params[n] for n in layers)
    din = int(w1.shape[0])
    hid = int(w1.shape[1])
    out = int(w4.shape[1])
    hp = _round_up(hid, _LANE)
    op = _round_up(out, _LANE)
    # TODO(synk): on v6e/v7x (256x256 MXU) pad hp/op to 256 when hid/out > 128
    # to avoid a half-utilized trailing MXU pass per layer (keep 128 on v5e).

    def prep_w(w, shape):
        return _pad_to(jnp.asarray(w, jnp.float32), shape).astype(jnp.bfloat16)

    def prep_b(b, out_p):
        b2d = jnp.asarray(b, jnp.float32).reshape(1, -1)  # accept (out,) or (1, out)
        return _pad_to(b2d, (1, out_p))

    return {
        "w1": prep_w(w1, (din, hp)), "b1": prep_b(b1, hp),
        "w2": prep_w(w2, (hp, hp)),  "b2": prep_b(b2, hp),
        "w3": prep_w(w3, (hp, hp)),  "b3": prep_b(b3, hp),
        "w4": prep_w(w4, (hp, op)),  "b4": prep_b(b4, op),
        "input_dim": din, "output_dim": out,
    }


def mlp_classifier_forward(x, prepared, *, batch_tile=512):
    """x: [B, input_dim] float32. prepared: output of prepare_params().

    Returns [B, output_dim] float32 logits.
    """
    w1, b1 = prepared["w1"], prepared["b1"]
    w2, b2 = prepared["w2"], prepared["b2"]
    w3, b3 = prepared["w3"], prepared["b3"]
    w4, b4 = prepared["w4"], prepared["b4"]
    output_dim = prepared["output_dim"]

    B, Din = x.shape
    assert Din == prepared["input_dim"], (Din, prepared["input_dim"])
    Hp = w1.shape[1]
    Op = w4.shape[1]

    # ---- VMEM budget (single-buffered resident weights + double-buffered
    # ---- streamed tiles + live activation scratch), generation-aware cap.
    resident = sum(a.size * a.dtype.itemsize
                   for a in (w1, b1, w2, b2, w3, b3, w4, b4))
    vmem_cap = _vmem_cap_bytes()
    # TODO(synk): if `resident` alone approaches the cap (hidden_dim >= ~2k on
    # v7x, ~4k on v5e/v6e), K-tile the Hp x Hp matmuls on a reduction grid axis
    # with a pl.when-guarded f32 accumulator instead of holding full weights
    # resident (and on v7x consider fp8 weights with per-channel scales).

    def tile_bytes(tb):
        streamed = 2 * (tb * Din * 4 + tb * Op * 2)   # dbl-buffered x (f32) / out (bf16)
        act = tb * Hp * 8 + tb * Op * 4               # live f32 + bf16 intermediates
        return streamed + act

    # ---- batch tiling: >= 2 tiles when the batch allows it (v7x megacore
    # ---- sharding of the "parallel" axis + input/output pipelining).
    Bp = _round_up(B, _MIN_TB)
    n_tiles = max(2, pl.cdiv(Bp, _round_up(batch_tile, _MIN_TB)))
    TB = _round_up(pl.cdiv(Bp, n_tiles), _MIN_TB)
    while TB > _MIN_TB and resident + tile_bytes(TB) + _HEADROOM_BYTES > vmem_cap:
        TB = _round_up(pl.cdiv(TB, 2), _MIN_TB)
    Bp = _round_up(Bp, TB)
    n_tiles = Bp // TB

    # Batch pad only (feature dim stays unpadded f32; cast happens in-kernel).
    xp = _pad_to(x, (Bp, Din))

    vmem_limit = int(min(max(resident + tile_bytes(TB) + _HEADROOM_BYTES, 32 << 20),
                         vmem_cap - (4 << 20)))

    def resident_spec(a):
        # Constant index_map: block never changes across the batch grid, so the
        # weight/bias stays resident in VMEM (DMA'd once).  Single-buffered
        # (Buffered(1)) since it is never re-fetched -> halves its VMEM footprint.
        idx = lambda i: (0,) * a.ndim
        try:
            return pl.BlockSpec(a.shape, idx, pipeline_mode=pl.Buffered(1))
        except (AttributeError, TypeError):
            return pl.BlockSpec(a.shape, idx)

    out_padded = pl.pallas_call(
        _mlp_kernel,
        out_shape=jax.ShapeDtypeStruct((Bp, Op), jnp.bfloat16),
        grid_spec=pltpu.PrefetchScalarGridSpec(
            num_scalar_prefetch=0,
            grid=(n_tiles,),
            in_specs=[pl.BlockSpec((TB, Din), lambda i: (i, 0)),
                      resident_spec(w1), resident_spec(b1),
                      resident_spec(w2), resident_spec(b2),
                      resident_spec(w3), resident_spec(b3),
                      resident_spec(w4), resident_spec(b4)],
            out_specs=pl.BlockSpec((TB, Op), lambda i: (i, 0)),
        ),
        compiler_params=pltpu.CompilerParams(
            # No cross-step carry on the batch axis: "parallel" lets v7x's two
            # TensorCores shard the batch tiles.
            dimension_semantics=("parallel",),
            vmem_limit_bytes=vmem_limit),
    )(xp, w1, b1, w2, b2, w3, b3, w4, b4)

    # Un-pad and upcast outside the kernel (cheap: [:B, :output_dim] slice).
    return out_padded[:B, :output_dim].astype(jnp.float32)


def init_params(key, input_dim, hidden_dim, output_dim):
    """Deterministic init mimicking nn.Linear default (U(-1/sqrt(fan_in), +))."""
    dims = [(input_dim, hidden_dim),
            (hidden_dim, hidden_dim),
            (hidden_dim, hidden_dim),
            (hidden_dim, output_dim)]
    names = ["input_layer", "hidden_layer1", "hidden_layer2", "output_layer"]
    params = {}
    for name, (fan_in, fan_out) in zip(names, dims):
        key, kw, kb = jax.random.split(key, 3)
        bound = 1.0 / (fan_in ** 0.5)
        # stored as [in, out] (transpose of PyTorch's [out, in]); bias 1-D like PyTorch
        w = jax.random.uniform(kw, (fan_in, fan_out), jnp.float32, -bound, bound)
        b = jax.random.uniform(kb, (fan_out,), jnp.float32, -bound, bound)
        params[name] = (w, b)
    return params


def mlp_reference(x, params, matmul_dtype=jnp.float32):
    """Pure-JAX reference; matmul_dtype=bfloat16 mirrors the kernel's math."""
    h = x
    for name in ["input_layer", "hidden_layer1", "hidden_layer2"]:
        w, b = params[name]
        h = jnp.dot(h.astype(matmul_dtype), w.astype(matmul_dtype),
                    preferred_element_type=jnp.float32) + b
        h = jnp.maximum(h, 0.0)
    w, b = params["output_layer"]
    return jnp.dot(h.astype(matmul_dtype), w.astype(matmul_dtype),
                   preferred_element_type=jnp.float32) + b


if __name__ == "__main__":
    key = jax.random.PRNGKey(0)
    batch, input_dim, hidden_dim, output_dim = 8, 16, 32, 10

    kp, kx = jax.random.split(key)
    params = init_params(kp, input_dim, hidden_dim, output_dim)
    x = jax.random.normal(kx, (batch, input_dim), jnp.float32)

    prepared = prepare_params(params)          # one-time weight pad + bf16 cast
    out = jax.block_until_ready(mlp_classifier_forward(x, prepared))

    assert out.shape == (batch, output_dim), out.shape
    # Check vs a bf16-matmul reference (what the kernel computes, modulo the
    # final bf16 store rounding).
    ref_bf16 = mlp_reference(x, params, matmul_dtype=jnp.bfloat16)
    assert jnp.allclose(out, ref_bf16, atol=2e-2, rtol=2e-2), "mismatch vs bf16 reference"
    # Semantic check vs the full-f32 MLP (loose tolerance for bf16 operands).
    ref_f32 = mlp_reference(x, params, matmul_dtype=jnp.float32)
    assert jnp.allclose(out, ref_f32, atol=6e-2, rtol=6e-2), "mismatch vs f32 reference"

    print("KERNEL_OK")
</pallas_src>

<mosaic_0001>
module attributes {stable_mosaic.version = 11 : i64} {
  func.func @_mlp_kernel(%arg0: i32, %arg1: memref<16x16xf32, #tpu.memory_space<vmem>>, %arg2: memref<16x128xbf16, #tpu.memory_space<vmem>>, %arg3: memref<1x128xf32, #tpu.memory_space<vmem>>, %arg4: memref<128x128xbf16, #tpu.memory_space<vmem>>, %arg5: memref<1x128xf32, #tpu.memory_space<vmem>>, %arg6: memref<128x128xbf16, #tpu.memory_space<vmem>>, %arg7: memref<1x128xf32, #tpu.memory_space<vmem>>, %arg8: memref<128x128xbf16, #tpu.memory_space<vmem>>, %arg9: memref<1x128xf32, #tpu.memory_space<vmem>>, %arg10: memref<16x128xbf16, #tpu.memory_space<vmem>>) attributes {dimension_semantics = [#tpu.dimension_semantics<parallel>], iteration_bounds = array<i64: 1>, scalar_prefetch = 0 : i64, scratch_operands = 0 : i64, tpu.core_type = #tpu.core_type<tc>, window_params = [{transform_indices = @transform_0, window_bounds = array<i64: 16, 16>}, {pipeline_mode = #tpu.pipeline_mode<synchronous>, transform_indices = @transform_1, window_bounds = array<i64: 16, 128>}, {pipeline_mode = #tpu.pipeline_mode<synchronous>, transform_indices = @transform_2, window_bounds = array<i64: 1, 128>}, {pipeline_mode = #tpu.pipeline_mode<synchronous>, transform_indices = @transform_3, window_bounds = array<i64: 128, 128>}, {pipeline_mode = #tpu.pipeline_mode<synchronous>, transform_indices = @transform_4, window_bounds = array<i64: 1, 128>}, {pipeline_mode = #tpu.pipeline_mode<synchronous>, transform_indices = @transform_5, window_bounds = array<i64: 128, 128>}, {pipeline_mode = #tpu.pipeline_mode<synchronous>, transform_indices = @transform_6, window_bounds = array<i64: 1, 128>}, {pipeline_mode = #tpu.pipeline_mode<synchronous>, transform_indices = @transform_7, window_bounds = array<i64: 128, 128>}, {pipeline_mode = #tpu.pipeline_mode<synchronous>, transform_indices = @transform_8, window_bounds = array<i64: 1, 128>}, {transform_indices = @transform_9, window_bounds = array<i64: 16, 128>}]} {
    %c0 = arith.constant 0 : index
    %c0_0 = arith.constant 0 : index
    %0 = vector.load %arg1[%c0, %c0_0] : memref<16x16xf32, #tpu.memory_space<vmem>>, vector<16x16xf32>
    %1 = arith.truncf %0 : vector<16x16xf32> to vector<16x16xbf16>
    %c0_1 = arith.constant 0 : index
    %c0_2 = arith.constant 0 : index
    %2 = vector.load %arg2[%c0_1, %c0_2] : memref<16x128xbf16, #tpu.memory_space<vmem>>, vector<16x128xbf16>
    %cst = arith.constant dense<0.000000e+00> : vector<16x128xf32>
    %3 = tpu.matmul %1, %2, %cst {dimension_numbers = #tpu.dot_dimension_numbers<[1], [0], [0], [1], [0, 0, 1, 1], [], []>} : vector<16x16xbf16>, vector<16x128xbf16>, vector<16x128xf32> -> vector<16x128xf32>
    %c0_3 = arith.constant 0 : index
    %c0_4 = arith.constant 0 : index
    %4 = vector.load %arg3[%c0_3, %c0_4] : memref<1x128xf32, #tpu.memory_space<vmem>>, vector<1x128xf32>
    %5 = vector.broadcast %4 : vector<1x128xf32> to vector<16x128xf32>
    %6 = arith.addf %3, %5 : vector<16x128xf32>
    %cst_5 = arith.constant 0.000000e+00 : f32
    %7 = vector.broadcast %cst_5 : f32 to vector<16x128xf32>
    %8 = arith.maximumf %6, %7 : vector<16x128xf32>
    %9 = arith.truncf %8 : vector<16x128xf32> to vector<16x128xbf16>
    %c0_6 = arith.constant 0 : index
    %c0_7 = arith.constant 0 : index
    %10 = vector.load %arg4[%c0_6, %c0_7] : memref<128x128xbf16, #tpu.memory_space<vmem>>, vector<128x128xbf16>
    %cst_8 = arith.constant dense<0.000000e+00> : vector<16x128xf32>
    %11 = tpu.matmul %9, %10, %cst_8 {dimension_numbers = #tpu.dot_dimension_numbers<[1], [0], [0], [1], [0, 0, 1, 1], [], []>} : vector<16x128xbf16>, vector<128x128xbf16>, vector<16x128xf32> -> vector<16x128xf32>
    %c0_9 = arith.constant 0 : index
    %c0_10 = arith.constant 0 : index
    %12 = vector.load %arg5[%c0_9, %c0_10] : memref<1x128xf32, #tpu.memory_space<vmem>>, vector<1x128xf32>
    %13 = vector.broadcast %12 : vector<1x128xf32> to vector<16x128xf32>
    %14 = arith.addf %11, %13 : vector<16x128xf32>
    %cst_11 = arith.constant 0.000000e+00 : f32
    %15 = vector.broadcast %cst_11 : f32 to vector<16x128xf32>
    %16 = arith.maximumf %14, %15 : vector<16x128xf32>
    %17 = arith.truncf %16 : vector<16x128xf32> to vector<16x128xbf16>
    %c0_12 = arith.constant 0 : index
    %c0_13 = arith.constant 0 : index
    %18 = vector.load %arg6[%c0_12, %c0_13] : memref<128x128xbf16, #tpu.memory_space<vmem>>, vector<128x128xbf16>
    %cst_14 = arith.constant dense<0.000000e+00> : vector<16x128xf32>
    %19 = tpu.matmul %17, %18, %cst_14 {dimension_numbers = #tpu.dot_dimension_numbers<[1], [0], [0], [1], [0, 0, 1, 1], [], []>} : vector<16x128xbf16>, vector<128x128xbf16>, vector<16x128xf32> -> vector<16x128xf32>
    %c0_15 = arith.constant 0 : index
    %c0_16 = arith.constant 0 : index
    %20 = vector.load %arg7[%c0_15, %c0_16] : memref<1x128xf32, #tpu.memory_space<vmem>>, vector<1x128xf32>
    %21 = vector.broadcast %20 : vector<1x128xf32> to vector<16x128xf32>
    %22 = arith.addf %19, %21 : vector<16x128xf32>
    %cst_17 = arith.constant 0.000000e+00 : f32
    %23 = vector.broadcast %cst_17 : f32 to vector<16x128xf32>
    %24 = arith.maximumf %22, %23 : vector<16x128xf32>
    %25 = arith.truncf %24 : vector<16x128xf32> to vector<16x128xbf16>
    %c0_18 = arith.constant 0 : index
    %c0_19 = arith.constant 0 : index
    %26 = vector.load %arg8[%c0_18, %c0_19] : memref<128x128xbf16, #tpu.memory_space<vmem>>, vector<128x128xbf16>
    %cst_20 = arith.constant dense<0.000000e+00> : vector<16x128xf32>
    %27 = tpu.matmul %25, %26, %cst_20 {dimension_numbers = #tpu.dot_dimension_numbers<[1], [0], [0], [1], [0, 0, 1, 1], [], []>} : vector<16x128xbf16>, vector<128x128xbf16>, vector<16x128xf32> -> vector<16x128xf32>
    %c0_21 = arith.constant 0 : index
    %c0_22 = arith.constant 0 : index
    %28 = vector.load %arg9[%c0_21, %c0_22] : memref<1x128xf32, #tpu.memory_space<vmem>>, vector<1x128xf32>
    %29 = vector.broadcast %28 : vector<1x128xf32> to vector<16x128xf32>
    %30 = arith.addf %27, %29 : vector<16x128xf32>
    %31 = arith.truncf %30 : vector<16x128xf32> to vector<16x128xbf16>
    %c0_23 = arith.constant 0 : index
    %c0_24 = arith.constant 0 : index
    %32 = vector.load %arg10[%c0_23, %c0_24] : memref<16x128xbf16, #tpu.memory_space<vmem>>, vector<16x128xbf16>
    tpu.vector_store %arg10[%c0_23, %c0_24], %31 {strides = array<i32>} : memref<16x128xbf16, #tpu.memory_space<vmem>>, vector<16x128xbf16>,
    return
  }
  func.func @transform_0(%arg0: i32) -> (i32, i32) {
    %c0_i32 = arith.constant 0 : i32
    %c0_i32_0 = arith.constant 0 : i32
    return %arg0, %c0_i32 : i32, i32
  }
  func.func @transform_1(%arg0: i32) -> (i32, i32) {
    %c0_i32 = arith.constant 0 : i32
    %c0_i32_0 = arith.constant 0 : i32
    %c0_i32_1 = arith.constant 0 : i32
    return %c0_i32, %c0_i32_0 : i32, i32
  }
  func.func @transform_2(%arg0: i32) -> (i32, i32) {
    %c0_i32 = arith.constant 0 : i32
    %c0_i32_0 = arith.constant 0 : i32
    %c0_i32_1 = arith.constant 0 : i32
    return %c0_i32, %c0_i32_0 : i32, i32
  }
  func.func @transform_3(%arg0: i32) -> (i32, i32) {
    %c0_i32 = arith.constant 0 : i32
    %c0_i32_0 = arith.constant 0 : i32
    %c0_i32_1 = arith.constant 0 : i32
    return %c0_i32, %c0_i32_0 : i32, i32
  }
  func.func @transform_4(%arg0: i32) -> (i32, i32) {
    %c0_i32 = arith.constant 0 : i32
    %c0_i32_0 = arith.constant 0 : i32
    %c0_i32_1 = arith.constant 0 : i32
    return %c0_i32, %c0_i32_0 : i32, i32
  }
  func.func @transform_5(%arg0: i32) -> (i32, i32) {
    %c0_i32 = arith.constant 0 : i32
    %c0_i32_0 = arith.constant 0 : i32
    %c0_i32_1 = arith.constant 0 : i32
    return %c0_i32, %c0_i32_0 : i32, i32
  }
  func.func @transform_6(%arg0: i32) -> (i32, i32) {
    %c0_i32 = arith.constant 0 : i32
    %c0_i32_0 = arith.constant 0 : i32
    %c0_i32_1 = arith.constant 0 : i32
    return %c0_i32, %c0_i32_0 : i32, i32
  }
  func.func @transform_7(%arg0: i32) -> (i32, i32) {
    %c0_i32 = arith.constant 0 : i32
    %c0_i32_0 = arith.constant 0 : i32
    %c0_i32_1 = arith.constant 0 : i32
    return %c0_i32, %c0_i32_0 : i32, i32
  }
  func.func @transform_8(%arg0: i32) -> (i32, i32) {
    %c0_i32 = arith.constant 0 : i32
    %c0_i32_0 = arith.constant 0 : i32
    %c0_i32_1 = arith.constant 0 : i32
    return %c0_i32, %c0_i32_0 : i32, i32
  }
  func.func @transform_9(%arg0: i32) -> (i32, i32) {
    %c0_i32 = arith.constant 0 : i32
    %c0_i32_0 = arith.constant 0 : i32
    return %arg0, %c0_i32 : i32, i32
  }
}

</mosaic_0001>

<bundles_post_ra>
// kernel: tpu_custom_call.1
= control target key start
LH: loop header
LB: loop body
LE: loop exit
PB: predicated region body
PF: predicated region fallthrough
CT: control target
= control target key end

     0   :  { %14 = vsyncpa [#allocation3], 0  ;;  %s978_s0 = inlined_call_operand.hbm [shape: f32[16,16], index: 0, kind: input, shape index: {}]   ;;  %s979_s1 = inlined_call_operand.hbm [shape: bf16[16,128], index: 1, kind: input, shape index: {}]   ;;  %s980_s2 = inlined_call_operand.vmem [shape: f32[1,128], index: 2, kind: input, shape index: {}]   ;;  %s981_s3 = inlined_call_operand.hbm [shape: bf16[128,128], index: 3, kind: input, shape index: {}]   ;;  %s982_s4 = inlined_call_operand.vmem [shape: f32[1,128], index: 4, kind: input, shape index: {}]   ;;  %s983_s5 = inlined_call_operand.hbm [shape: bf16[128,128], index: 5, kind: input, shape index: {}]   ;;  %s984_s6 = inlined_call_operand.vmem [shape: f32[1,128], index: 6, kind: input, shape index: {}]   ;;  %s985_s7 = inlined_call_operand.hbm [shape: bf16[128,128], index: 7, kind: input, shape index: {}]   ;;  %s986_s8 = inlined_call_operand.vmem [shape: f32[1,128], index: 8, kind: input, shape index: {}]   ;;  %s987_s9 = inlined_call_operand.hbm [shape: bf16[16,128], index: 9, kind: output, shape index: {}]  }
   0x1   :  { %15 = vsyncpa [#allocation6], 0 }
   0x2   :  { %16 = vsyncpa [#allocation9], 0 }
   0x3   :  { %17 = vsyncpa [#allocation4], 0  ;;  %s838_s30 = smov [#allocation5]  }
   0x4   :  { %s35_s10 = sshll.u32 %s838_s30, 4  ;;  %s36_s10 = int_to_ptr.vmem [resolvable:$true] %s35_s10 }
   0x5   :  { %s718_s11 = scalar_lea.vmem %s36_s10, 128  ;;  %p723_p1 = scmp.lt.s32.totalorder %s36_s10, %s36_s10 }
   0x6   :  { %p719_p0 = scmp.ne.s32.totalorder %s36_s10, %s718_s11  ;;  %p724_p2 = scmp.lt.s32.totalorder %s718_s11, %s718_s11 }
   0x8   :  { %p725_p3 = por %p724_p2, %p723_p1 }
   0xa   :  { %p726_p4 = pnand %p725_p3, %p719_p0 }
   0xc   :  { %729 = shalt.err (!%p726_p4)
}
   0xd   :  { %s839_s12 = smov 64   ;;  %s840_s13 = smov 4  }
   0xe   :  { %41 = dma.hbm_to_vmem [thread:$0]  %s979_s1, 128, %s36_s10, [#allocation6], %s839_s12, %s839_s12, %s840_s13  }
   0xf   :  { %s841_s16 = smov [#allocation8]   ;;  %s842_s18 = smov [#allocation2]  }
  0x10   :  { %s63_s17 = sshll.u32 %s841_s16, 4  ;;  %s23_s19 = sshll.u32 %s842_s18, 4  ;;  %s64_s17 = int_to_ptr.vmem [resolvable:$true] %s63_s17  ;;  %s24_s19 = int_to_ptr.vmem [resolvable:$true] %s23_s19 }
  0x11   :  { %s738_s20 = scalar_lea.vmem %s64_s17, 1024  ;;  %p743_p6 = scmp.lt.s32.totalorder %s64_s17, %s64_s17 }
  0x12   :  { %p739_p5 = scmp.ne.s32.totalorder %s64_s17, %s738_s20  ;;  %p744_p7 = scmp.lt.s32.totalorder %s738_s20, %s738_s20 }
  0x14   :  { %p745_p8 = por %p744_p7, %p743_p6 }
  0x16   :  { %p746_p9 = pnand %p745_p8, %p739_p5 }
  0x18   :  { %749 = shalt.err (!%p746_p9)
}
  0x19   :  { %69 = dma.hbm_to_vmem [thread:$0]  %s983_s5, 1024, %s64_s17, [#allocation9], %s839_s12, %s839_s12, %s840_s13  }
  0x1a   :  { %s758_s1 = scalar_lea.vmem %s24_s19, 256  ;;  %p763_p11 = scmp.lt.s32.totalorder %s24_s19, %s24_s19 }
  0x1b   :  { %p759_p10 = scmp.ne.s32.totalorder %s24_s19, %s758_s1  ;;  %p764_p12 = scmp.lt.s32.totalorder %s758_s1, %s758_s1 }
  0x1d   :  { %p765_p13 = por %p764_p12, %p763_p11 }
  0x1f   :  { %p766_p0 = pnand %p765_p13, %p759_p10 }
  0x21   :  { %769 = shalt.err (!%p766_p0)
}
  0x22   :  { %s843_s23 = smov 128   ;;  %s844_s24 = smov 8  }
  0x23   :  { %29 = dma.hbm_to_vmem [thread:$0]  %s978_s0, 256, %s24_s19, [#allocation3], %s843_s23, %s843_s23, %s844_s24  }
  0x24   :  { %s845_s27 = smov [#allocation7]   ;;  %s846_s29 = smov [#allocation10]  }
  0x25   :  { %s49_s28 = sshll.u32 %s845_s27, 4  ;;  %s77_s30 = sshll.u32 %s846_s29, 4  ;;  %s50_s28 = int_to_ptr.vmem [resolvable:$true] %s49_s28  ;;  %s78_s30 = int_to_ptr.vmem [resolvable:$true] %s77_s30 }
  0x26   :  { %s778_s5 = scalar_lea.vmem %s50_s28, 1024  ;;  %p783_p2 = scmp.lt.s32.totalorder %s50_s28, %s50_s28 }
  0x27   :  { %p779_p1 = scmp.ne.s32.totalorder %s50_s28, %s778_s5  ;;  %p784_p3 = scmp.lt.s32.totalorder %s778_s5, %s778_s5 }
  0x29   :  { %p785_p4 = por %p784_p3, %p783_p2 }
  0x2b   :  { %p786_p5 = pnand %p785_p4, %p779_p1 }
  0x2d   :  { %789 = shalt.err (!%p786_p5)
}
  0x2e   :  { %55 = dma.hbm_to_vmem [thread:$0]  %s981_s3, 1024, %s50_s28, [#allocation6], %s839_s12, %s839_s12, %s840_s13  }
  0x2f   :  { %s798_s0 = scalar_lea.vmem %s78_s30, 1024  ;;  %p803_p7 = scmp.lt.s32.totalorder %s78_s30, %s78_s30 }
  0x30   :  { %p799_p6 = scmp.ne.s32.totalorder %s78_s30, %s798_s0  ;;  %p804_p8 = scmp.lt.s32.totalorder %s798_s0, %s798_s0 }
  0x32   :  { %p805_p9 = por %p804_p8, %p803_p7 }
  0x34   :  { %p806_p10 = pnand %p805_p9, %p799_p6 }
  0x36   :  { %809 = shalt.err (!%p806_p10)
}
  0x37   :  { %83 = dma.hbm_to_vmem [thread:$0]  %s985_s7, 1024, %s78_s30, [#allocation9], %s839_s12, %s839_s12, %s840_s13  }
  0x38   :  { %830 = dma.done.wait [#allocation3], 256  }
  0x39   :  { %831 = vsyncadd [#allocation3], 4294967040 }
  0x3a   :  { %832 = dma.done.wait [#allocation6], 1152  }
  0x3b   :  { %833 = vsyncadd [#allocation6], 4294966144 }
  0x3c   :  { %834 = dma.done.wait [#allocation9], 2048  }
  0x3d   :  { %835 = vsyncadd [#allocation9], 4294965248  ;;  %v847_v0 = vmov 0.0   ;;  %vm848_vm0 = vmmov 0   ;;  %v685_v1 = vld [vmem:[#allocation5] sm:$0xff]   ;;  %v102_v2 = vld [vmem:[#allocation2] sm:$0xff] }
  0x3e   :  { %607 = vmatprep.subr.bf16.mxu0 %v847_v0  ;;  %609 = vmatprep.mubr.msk.bf16.mxu0 %vm848_vm0, %v847_v0  ;;  %v103_v3 = vld [vmem:[#allocation2 + $0x8] sm:$0xff]  ;;  %vm120_vm1 = vcmask 130048   ;;  %v686_v5 = vld [vmem:[#allocation7 + $0x38] sm:$0xff]   ;;  %v688_v7 = vld [vmem:[#allocation7 + $0x28] sm:$0xff]   ;;  %s849_s20 = smov [#allocation11]  }
  0x3f   :  { %613 = vmatprep.subr.bf16.mxu1 %v847_v0  ;;  %629 = vmatprep.mubr.msk.bf16.mxu1 %vm848_vm0, %v847_v0  ;;  %v104_v4 = vpack.c.bf16 %v103_v3, %v102_v2  ;;  %v687_v6 = vld [vmem:[#allocation7 + $0x30] sm:$0xff]   ;;  %v689_v8 = vld [vmem:[#allocation7 + $0x20] sm:$0xff]   ;;  %v690_v9 = vld [vmem:[#allocation7 + $0x18] sm:$0xff]   ;;  %s525_s21 = sshll.u32 %s849_s20, 4  ;;  %s526_s21 = int_to_ptr.vmem [resolvable:$true] %s525_s21 }
  0x40   :  { %608 = vmatpush3.bf16.msra.mxu0 %v685_v1  ;;  %614 = vmatpush3.bf16.msra.mxu1 %v686_v5  ;;  %v691_v10 = vld [vmem:[#allocation7 + $0x10] sm:$0xff]   ;;  %v692_v11 = vld [vmem:[#allocation7 + $0x8] sm:$0xff]   ;;  %v693_v12 = vld [vmem:[#allocation7] sm:$0xff]   ;;  %p815_p12 = scmp.lt.s32.totalorder %s526_s21, %s526_s21 }
  0x41   :  { %633 = vmatprep.subr.bf16.mxu0 %v847_v0  ;;  %615 = vmatprep.subr.bf16.mxu1 %v847_v0  ;;  %v694_v13 = vld [vmem:[#allocation8 + $0x38] sm:$0xff]   ;;  %v695_v14 = vld [vmem:[#allocation8 + $0x30] sm:$0xff]   ;;  %v696_v15 = vld [vmem:[#allocation8 + $0x28] sm:$0xff]  }
  0x42   :  { %v697_v16 = vld [vmem:[#allocation8 + $0x20] sm:$0xff]   ;;  %v698_v17 = vld [vmem:[#allocation8 + $0x18] sm:$0xff]   ;;  %v539_v18 = vld [vmem:[%s980_s2] ss:$0 sm:$0xff] }
  0x43   :  { %610 = vmatmul.mubr.msk.bf16.vlgmr.msra.gmra.mxu0 %vm120_vm1, %v104_v4  ;;  %v699_v28 = vld [vmem:[#allocation8 + $0x10] sm:$0xff]   ;;  %v700_v29 = vld [vmem:[#allocation8 + $0x8] sm:$0xff]   ;;  %v701_v30 = vld [vmem:[#allocation8] sm:$0xff]  }
  0x44   :  { %649 = vmatprep.mubr.msk.bf16.mxu0 %vm848_vm0, %v847_v0  ;;  %616 = vmatpush3.bf16.msra.mxu1 %v687_v6  ;;  %v702_v31 = vld [vmem:[#allocation10 + $0x38] sm:$0xff]   ;;  %v703_v32 = vld [vmem:[#allocation10 + $0x30] sm:$0xff]   ;;  %v704_v33 = vld [vmem:[#allocation10 + $0x28] sm:$0xff]  }
  0x45   :  { %617 = vmatprep.subr.bf16.mxu1 %v847_v0  ;;  %634 = vmatpush3.bf16.msra.mxu0 %v694_v13  ;;  %v705_v34 = vld [vmem:[#allocation10 + $0x20] sm:$0xff]   ;;  %v706_v35 = vld [vmem:[#allocation10 + $0x18] sm:$0xff]   ;;  %v542_v36 = vld [vmem:[%s982_s4] ss:$0 sm:$0xff] }
  0x46   :  { %635 = vmatprep.subr.bf16.mxu0 %v847_v0  ;;  %v707_v46 = vld [vmem:[#allocation10 + $0x10] sm:$0xff]   ;;  %v708_v47 = vld [vmem:[#allocation10 + $0x8] sm:$0xff]   ;;  %v709_v48 = vld [vmem:[#allocation10] sm:$0xff]  }
  0x47   :  { %v551_v49 = vld [vmem:[%s984_s6] ss:$0 sm:$0xff]  ;;  %s810_s6 = scalar_lea.vmem %s526_s21, 128 }
  0x48   :  { %618 = vmatpush3.bf16.msra.mxu1 %v688_v7  ;;  %v560_v60 = vld [vmem:[%s986_s8] ss:$0 sm:$0xff]  ;;  %p811_p11 = scmp.ne.s32.totalorder %s526_s21, %s810_s6  ;;  %p816_p13 = scmp.lt.s32.totalorder %s810_s6, %s810_s6 }
  0x49   :  { %619 = vmatprep.subr.bf16.mxu1 %v847_v0  ;;  %636 = vmatpush3.bf16.msra.mxu0 %v695_v14 }
  0x4a   :  { %637 = vmatprep.subr.bf16.mxu0 %v847_v0  ;;  %p817_p0 = por %p816_p13, %p815_p12 }
  0x4c   :  { %620 = vmatpush3.bf16.msra.mxu1 %v689_v8  ;;  %p818_p1 = pnand %p817_p0, %p811_p11 }
  0x4d   :  { %621 = vmatprep.subr.bf16.mxu1 %v847_v0  ;;  %638 = vmatpush3.bf16.msra.mxu0 %v696_v15 }
  0x4e   :  { %639 = vmatprep.subr.bf16.mxu0 %v847_v0 }
  0x50   :  { %622 = vmatpush3.bf16.msra.mxu1 %v690_v9 }
  0x51   :  { %623 = vmatprep.subr.bf16.mxu1 %v847_v0  ;;  %640 = vmatpush3.bf16.msra.mxu0 %v697_v16 }
  0x52   :  { %641 = vmatprep.subr.bf16.mxu0 %v847_v0 }
  0x54   :  { %624 = vmatpush3.bf16.msra.mxu1 %v691_v10 }
  0x55   :  { %625 = vmatprep.subr.bf16.mxu1 %v847_v0  ;;  %642 = vmatpush3.bf16.msra.mxu0 %v698_v17 }
  0x56   :  { %643 = vmatprep.subr.bf16.mxu0 %v847_v0 }
  0x58   :  { %626 = vmatpush3.bf16.msra.mxu1 %v692_v11 }
  0x59   :  { %627 = vmatprep.subr.bf16.mxu1 %v847_v0  ;;  %644 = vmatpush3.bf16.msra.mxu0 %v699_v28 }
  0x5a   :  { %645 = vmatprep.subr.bf16.mxu0 %v847_v0 }
  0x5c   :  { %628 = vmatpush3.bf16.msra.mxu1 %v693_v12 }
  0x5d   :  { %653 = vmatprep.subr.bf16.mxu1 %v847_v0  ;;  %646 = vmatpush3.bf16.msra.mxu0 %v700_v29 }
  0x5e   :  { %647 = vmatprep.subr.bf16.mxu0 %v847_v0 }
  0x61   :  { %648 = vmatpush3.bf16.msra.mxu0 %v701_v30 }
 0x103   :  { %v158_v19 = vpop.f32.mrf.mxu0 }
 0x104   :  { %v159_v21 = vadd.f32 %v539_v18, %v158_v19 }
 0x105   :  { %v611_v20 = vpop.f32.mrf.mxu0 }
 0x106   :  { %v165_v25 = vmax.f32 %v159_v21, 0.0 }
 0x107   :  { %v161_v22 = vpop.f32.mrf.mxu0 }
 0x108   :  { %v162_v23 = vadd.f32 %v539_v18, %v161_v22 }
 0x109   :  { %v612_v24 = vpop.f32.mrf.mxu0 }
 0x10a   :  { %v166_v26 = vmax.f32 %v162_v23, 0.0 }
 0x10c   :  { %v167_v27 = vpack.c.bf16 %v166_v26, %v165_v25 }
 0x10e   :  { %630 = vmatmul.mubr.bf16.vlgmr.msra.gmra.mxu1 %v167_v27 }
 0x10f   :  { %669 = vmatprep.mubr.msk.bf16.mxu1 %vm848_vm0, %v847_v0  ;;  %654 = vmatpush3.bf16.msra.mxu1 %v702_v31 }
 0x110   :  { %655 = vmatprep.subr.bf16.mxu1 %v847_v0 }
 0x113   :  { %656 = vmatpush3.bf16.msra.mxu1 %v703_v32 }
 0x114   :  { %657 = vmatprep.subr.bf16.mxu1 %v847_v0 }
 0x117   :  { %658 = vmatpush3.bf16.msra.mxu1 %v704_v33 }
 0x118   :  { %659 = vmatprep.subr.bf16.mxu1 %v847_v0 }
 0x11b   :  { %660 = vmatpush3.bf16.msra.mxu1 %v705_v34 }
 0x11c   :  { %661 = vmatprep.subr.bf16.mxu1 %v847_v0 }
 0x11f   :  { %662 = vmatpush3.bf16.msra.mxu1 %v706_v35 }
 0x120   :  { %663 = vmatprep.subr.bf16.mxu1 %v847_v0 }
 0x123   :  { %664 = vmatpush3.bf16.msra.mxu1 %v707_v46 }
 0x124   :  { %665 = vmatprep.subr.bf16.mxu1 %v847_v0 }
 0x127   :  { %666 = vmatpush3.bf16.msra.mxu1 %v708_v47 }
 0x128   :  { %667 = vmatprep.subr.bf16.mxu1 %v847_v0 }
 0x12b   :  { %668 = vmatpush3.bf16.msra.mxu1 %v709_v48 }
 0x1ce   :  { %v273_v37 = vpop.f32.mrf.mxu1 }
 0x1cf   :  { %v274_v39 = vadd.f32 %v542_v36, %v273_v37 }
 0x1d0   :  { %v631_v38 = vpop.f32.mrf.mxu1 }
 0x1d1   :  { %v280_v43 = vmax.f32 %v274_v39, 0.0 }
 0x1d2   :  { %v276_v40 = vpop.f32.mrf.mxu1 }
 0x1d3   :  { %v277_v41 = vadd.f32 %v542_v36, %v276_v40 }
 0x1d4   :  { %v632_v42 = vpop.f32.mrf.mxu1 }
 0x1d5   :  { %v281_v44 = vmax.f32 %v277_v41, 0.0 }
 0x1d7   :  { %v282_v45 = vpack.c.bf16 %v281_v44, %v280_v43 }
 0x1d9   :  { %650 = vmatmul.mubr.bf16.vlgmr.msra.gmra.mxu0 %v282_v45 }
 0x299   :  { %v388_v50 = vpop.f32.mrf.mxu0 }
 0x29a   :  { %v389_v52 = vadd.f32 %v551_v49, %v388_v50 }
 0x29b   :  { %v651_v51 = vpop.f32.mrf.mxu0 }
 0x29c   :  { %v395_v56 = vmax.f32 %v389_v52, 0.0 }
 0x29d   :  { %v391_v53 = vpop.f32.mrf.mxu0 }
 0x29e   :  { %v392_v54 = vadd.f32 %v551_v49, %v391_v53 }
 0x29f   :  { %v652_v55 = vpop.f32.mrf.mxu0 }
 0x2a0   :  { %v396_v57 = vmax.f32 %v392_v54, 0.0 }
 0x2a2   :  { %v397_v58 = vpack.c.bf16 %v396_v57, %v395_v56 }
 0x2a4   :  { %670 = vmatmul.mubr.bf16.vlgmr.msra.gmra.mxu1 %v397_v58 }
 0x364   :  { %v503_v59 = vpop.f32.mrf.mxu1 }
 0x365   :  { %v504_v63 = vadd.f32 %v560_v60, %v503_v59 }
 0x366   :  { %v671_v61 = vpop.f32.mrf.mxu1 }
 0x368   :  { %v506_v62 = vpop.f32.mrf.mxu1 }
 0x369   :  { %v507_v0 = vadd.f32 %v560_v60, %v506_v62 }
 0x36a   :  { %v672_v1 = vpop.f32.mrf.mxu1 }
 0x36b   :  { %v576_v2 = vpack.c.bf16 %v507_v0, %v504_v63 }
 0x36d   :  { %577 = vst [vmem:[#allocation11] sm:$0xff] %v576_v2  }
 0x36e   :  { %821 = shalt.err (!%p818_p1)
}
 0x36f   :  { %531 = dma.vmem_to_hbm [thread:$0]  %s526_s21, 128, %s987_s9, [#allocation4], %s839_s12, %s839_s12, %s840_s13  }
 0x370   :  { %836 = dma.done.wait [#allocation4], 128  }
 0x371   :  { %837 = vsyncadd [#allocation4], 4294967168 }
 0x372   :  { %535 = vsyncpa [#allocation3], 1 }
 0x373   :  { %536 = vsyncpa [#allocation6], 1 }
 0x374   :  { %537 = vsyncpa [#allocation9], 1 }
 0x375   :  { %538 = vsyncpa [#allocation4], 1 }

</bundles_post_ra>
